<compile_context>
chip_gen: v7x
topology: tpu7x:2x2x1
jax: 0.10.0
libtpu: 0.0.40
codegen_flags: <defaults>
</compile_context>

<pallas_src>
import functools

import jax
import jax.numpy as jnp
from jax.experimental import pallas as pl
from jax.experimental.pallas import tpu as pltpu


# --------------------------------------------------------------------------
# The single fused kernel (grid-less, everything VMEM-resident)
# --------------------------------------------------------------------------
def _social_kernel(data_ref, w_ref, b_ref, o_ref, *,
                   batch, seq_len, num_other, ne_pad):
    B, T, A1 = batch, seq_len, num_other
    NE, NO = B * T, B * A1
    H = w_ref.shape[2]

    def dot(a, w):
        return jnp.dot(a, w, preferred_element_type=jnp.float32)

    x_in = data_ref[0]                 # [Ntot, H] feature-padded input rows
    rmask = data_ref[1]                # [Ntot, H] per-row agent-presence mask

    bias = b_ref[...]                  # [7, H]
    b1, b2, bq, bk, bv, bo, bf = (bias[i:i + 1, :] for i in range(7))
    w1, w2, wq, wk, wv, wo, wft, wfb, blk = (w_ref[i] for i in range(9))

    # ---- agent_encoder MLP on exactly the rows the forward needs ----------
    # rows = [ ego trajectory (B*T) | pad | other agents' last step (B*A1) ]
    h1 = jnp.maximum(dot(x_in, w1) + b1, 0.0)
    feat = (dot(h1, w2) + b2) * rmask              # zero rows for absent agents

    ego_traj = feat[:NE, :]                        # [B*T, H]
    oth = feat[ne_pad:ne_pad + NO, :]              # [B*A1, H]

    # fusion "top half" matmul — computed once, reused for both fusions
    ego_ft = dot(ego_traj, wft)                    # [B*T, H]

    # per-batch last-step rows (static sublane slices, unrolled over tiny B)
    ego_last = jnp.concatenate(
        [ego_traj[b * T + T - 1:b * T + T, :] for b in range(B)], axis=0)   # [B, H]
    ego_ft_last = jnp.concatenate(
        [ego_ft[b * T + T - 1:b * T + T, :] for b in range(B)], axis=0)     # [B, H]

    # torch: `if sum(|other_features|) > 0`  (global over batch & agents)
    s_tot = jnp.sum(jnp.abs(oth), keepdims=True)   # [1, 1]

    # ---- multi-head attention: all heads at once via block-diagonal blk ----
    q = dot(ego_last, wq) + bq                     # [B, H]
    k = dot(oth, wk) + bk                          # [B*A1, H]
    v = dot(oth, wv) + bv                          # [B*A1, H]

    # q (per batch) broadcast onto that batch's key rows, then one matmul
    # against the block-diagonal head matrix (scale folded in): every lane of
    # head n carries head n's score, so softmax over agents is lane-wise.
    qk = jnp.concatenate(
        [q[b:b + 1, :] * k[b * A1:(b + 1) * A1, :] for b in range(B)], axis=0)  # [B*A1, H]
    logits = dot(qk, blk)                          # [B*A1, H]

    ctx_rows = []
    for b in range(B):                             # B is static & tiny
        lb = logits[b * A1:(b + 1) * A1, :]        # [A1, H]
        vb = v[b * A1:(b + 1) * A1, :]             # [A1, H]
        mx = jnp.max(lb, axis=0, keepdims=True)
        e = jnp.exp(lb - mx)
        p = e / jnp.sum(e, axis=0, keepdims=True)  # exact softmax over agents
        ctx_rows.append(jnp.sum(p * vb, axis=0, keepdims=True))
    ctx = jnp.concatenate(ctx_rows, axis=0)        # [B, H]
    attn = dot(ctx, wo) + bo                       # [B, H]

    # ---- feature_fusion #1:  [ego_last | attn] @ wf + bf -------------------
    fused = ego_ft_last + dot(attn, wfb) + bf      # [B, H]
    social = jnp.where(s_tot > 0.0, fused, ego_last)   # [B, H]

    # ---- feature_fusion #2: [ego_traj | social repeated over T] @ wf + bf --
    soc_fb = dot(social, wfb) + bf                 # [B, H]
    soc_rep = jnp.concatenate(
        [jnp.broadcast_to(soc_fb[b:b + 1, :], (T, H)) for b in range(B)], axis=0)  # [B*T, H]
    o_ref[...] = (ego_ft + soc_rep).astype(o_ref.dtype)


# --------------------------------------------------------------------------
# Parameters (deterministic synthetic init; same shapes as the torch module)
# --------------------------------------------------------------------------
def init_params(key, input_dim, hidden_dim):
    ks = jax.random.split(key, 12)
    s = 0.1

    def w(k, shape):
        return s * jax.random.normal(k, shape, dtype=jnp.float32)

    return {
        "w1": w(ks[0], (input_dim, hidden_dim)),
        "b1": w(ks[1], (1, hidden_dim)),
        "w2": w(ks[2], (hidden_dim, hidden_dim)),
        "b2": w(ks[3], (1, hidden_dim)),
        "wq": w(ks[4], (hidden_dim, hidden_dim)),
        "bq": w(ks[5], (1, hidden_dim)),
        "wk": w(ks[6], (hidden_dim, hidden_dim)),
        "bk": w(ks[7], (1, hidden_dim)),
        "wv": w(ks[8], (hidden_dim, hidden_dim)),
        "bv": w(ks[9], (1, hidden_dim)),
        "wo": w(ks[10], (hidden_dim, hidden_dim)),
        "bo": jnp.zeros((1, hidden_dim), dtype=jnp.float32),
        "wf": w(ks[11], (2 * hidden_dim, hidden_dim)),
        "bf": jnp.zeros((1, hidden_dim), dtype=jnp.float32),
    }


# --------------------------------------------------------------------------
# Forward-pass wrapper: only free layout plumbing / slab packing lives here
# --------------------------------------------------------------------------
def social_context_encoder(x, params, *, num_heads):
    B, A, T, D = x.shape
    H = params["w2"].shape[1]
    assert D <= H, "input_dim must fit inside the H-wide stacked weight slab"
    assert H % num_heads == 0

    # Torch skips attention entirely for a single-agent scene; emulate by
    # padding one all-zero agent (its mask forces the "ego only" branch).
    if A == 1:
        x = jnp.concatenate([x, jnp.zeros((B, 1, T, D), x.dtype)], axis=1)
        A = 2
    A1 = A - 1

    NE = B * T                         # ego-trajectory rows
    NE_pad = -(-NE // 8) * 8           # others block starts sublane-tile aligned
    NO = B * A1                        # other agents' last-step rows
    Ntot = NE_pad + NO

    # per-agent presence mask  (torch: `if sum(|x[:, i]|) > 0`), computed in XLA
    m = (jnp.sum(jnp.abs(x), axis=(0, 2, 3)) > 0.0).astype(jnp.float32)     # [A]

    # data slab plane 0: feature-padded input rows [ ego traj | pad | others ]
    ego_rows = x[:, 0, :, :].reshape(NE, D)
    oth_rows = x[:, 1:, -1, :].reshape(NO, D)
    rows = jnp.zeros((Ntot, H), jnp.float32)
    rows = rows.at[:NE, :D].set(ego_rows)
    rows = rows.at[NE_pad:, :D].set(oth_rows)

    # data slab plane 1: per-row agent mask, pre-broadcast to H lanes
    row_mask = jnp.zeros((Ntot,), jnp.float32)
    row_mask = row_mask.at[:NE].set(m[0])
    row_mask = row_mask.at[NE_pad:].set(jnp.tile(m[1:], (B,)))
    data = jnp.stack([rows, jnp.broadcast_to(row_mask[:, None], (Ntot, H))],
                     axis=0)                                                # [2, Ntot, H]

    # stacked weights: w1 zero-padded to [H, H]; blk = block-diagonal per-head
    # score matrix with the 1/sqrt(head_dim) attention scale folded in.
    w1p = jnp.zeros((H, H), jnp.float32).at[:D, :].set(params["w1"])
    hd = H // num_heads
    head = jnp.arange(H, dtype=jnp.int32) // hd
    blk = (head[:, None] == head[None, :]).astype(jnp.float32) / jnp.sqrt(
        jnp.float32(hd))
    W = jnp.stack([w1p, params["w2"], params["wq"], params["wk"], params["wv"],
                   params["wo"], params["wf"][:H, :], params["wf"][H:, :], blk],
                  axis=0)                                                   # [9, H, H]
    Bstk = jnp.concatenate([params["b1"], params["b2"], params["bq"],
                            params["bk"], params["bv"], params["bo"],
                            params["bf"]], axis=0)                          # [7, H]

    kernel = functools.partial(_social_kernel, batch=B, seq_len=T,
                               num_other=A1, ne_pad=NE_pad)
    vmem = lambda: pl.BlockSpec(memory_space=pltpu.MemorySpace.VMEM)

    out_flat = pl.pallas_call(
        kernel,
        out_shape=jax.ShapeDtypeStruct((NE, H), jnp.float32),
        in_specs=[vmem(), vmem(), vmem()],
        out_specs=vmem(),
    )(data, W, Bstk)
    return out_flat.reshape(B, T, H)   # free metadata reshape


# --------------------------------------------------------------------------
if __name__ == "__main__":
    B, A, T = 2, 3, 8          # batch, num_agents, seq_len
    D, H, NH = 6, 32, 4        # input_dim, hidden_dim, num_heads (H % NH == 0)

    key = jax.random.PRNGKey(0)
    x = jax.random.normal(key, (B, A, T, D), dtype=jnp.float32)
    params = init_params(jax.random.PRNGKey(42), D, H)

    fwd = jax.jit(functools.partial(social_context_encoder, num_heads=NH))
    out = jax.block_until_ready(fwd(x, params))

    assert out.shape == (B, T, H), out.shape
    assert bool(jnp.isfinite(out).all())
    print("KERNEL_OK")
</pallas_src>

<mosaic_0001>
module attributes {stable_mosaic.version = 11 : i64} {
  func.func @_social_kernel(%arg0: memref<2x20x32xf32, #tpu.memory_space<vmem>>, %arg1: memref<9x32x32xf32, #tpu.memory_space<vmem>>, %arg2: memref<7x32xf32, #tpu.memory_space<vmem>>, %arg3: memref<16x32xf32, #tpu.memory_space<vmem>>) attributes {dimension_semantics = [], scalar_prefetch = 0 : i64, scratch_operands = 0 : i64, tpu.core_type = #tpu.core_type<tc>} {
    %c0 = arith.constant 0 : index
    %c0_0 = arith.constant 0 : index
    %c0_1 = arith.constant 0 : index
    %0 = vector.load %arg0[%c0, %c0_0, %c0_1] : memref<2x20x32xf32, #tpu.memory_space<vmem>>, vector<1x20x32xf32>
    %1 = vector.shape_cast %0 : vector<1x20x32xf32> to vector<20x32xf32>
    %c1 = arith.constant 1 : index
    %c0_2 = arith.constant 0 : index
    %c0_3 = arith.constant 0 : index
    %2 = vector.load %arg0[%c1, %c0_2, %c0_3] : memref<2x20x32xf32, #tpu.memory_space<vmem>>, vector<1x20x32xf32>
    %3 = vector.shape_cast %2 : vector<1x20x32xf32> to vector<20x32xf32>
    %c0_4 = arith.constant 0 : index
    %c0_5 = arith.constant 0 : index
    %4 = vector.load %arg2[%c0_4, %c0_5] : memref<7x32xf32, #tpu.memory_space<vmem>>, vector<7x32xf32>
    %5 = vector.extract_strided_slice %4 {offsets = [0, 0], sizes = [1, 32], strides = [1, 1]} : vector<7x32xf32> to vector<1x32xf32>
    %6 = vector.extract_strided_slice %4 {offsets = [1, 0], sizes = [1, 32], strides = [1, 1]} : vector<7x32xf32> to vector<1x32xf32>
    %7 = vector.extract_strided_slice %4 {offsets = [2, 0], sizes = [1, 32], strides = [1, 1]} : vector<7x32xf32> to vector<1x32xf32>
    %8 = vector.extract_strided_slice %4 {offsets = [3, 0], sizes = [1, 32], strides = [1, 1]} : vector<7x32xf32> to vector<1x32xf32>
    %9 = vector.extract_strided_slice %4 {offsets = [4, 0], sizes = [1, 32], strides = [1, 1]} : vector<7x32xf32> to vector<1x32xf32>
    %10 = vector.extract_strided_slice %4 {offsets = [5, 0], sizes = [1, 32], strides = [1, 1]} : vector<7x32xf32> to vector<1x32xf32>
    %11 = vector.extract_strided_slice %4 {offsets = [6, 0], sizes = [1, 32], strides = [1, 1]} : vector<7x32xf32> to vector<1x32xf32>
    %c0_6 = arith.constant 0 : index
    %c0_7 = arith.constant 0 : index
    %c0_8 = arith.constant 0 : index
    %12 = vector.load %arg1[%c0_6, %c0_7, %c0_8] : memref<9x32x32xf32, #tpu.memory_space<vmem>>, vector<1x32x32xf32>
    %13 = vector.shape_cast %12 : vector<1x32x32xf32> to vector<32x32xf32>
    %c1_9 = arith.constant 1 : index
    %c0_10 = arith.constant 0 : index
    %c0_11 = arith.constant 0 : index
    %14 = vector.load %arg1[%c1_9, %c0_10, %c0_11] : memref<9x32x32xf32, #tpu.memory_space<vmem>>, vector<1x32x32xf32>
    %15 = vector.shape_cast %14 : vector<1x32x32xf32> to vector<32x32xf32>
    %c2 = arith.constant 2 : index
    %c0_12 = arith.constant 0 : index
    %c0_13 = arith.constant 0 : index
    %16 = vector.load %arg1[%c2, %c0_12, %c0_13] : memref<9x32x32xf32, #tpu.memory_space<vmem>>, vector<1x32x32xf32>
    %17 = vector.shape_cast %16 : vector<1x32x32xf32> to vector<32x32xf32>
    %c3 = arith.constant 3 : index
    %c0_14 = arith.constant 0 : index
    %c0_15 = arith.constant 0 : index
    %18 = vector.load %arg1[%c3, %c0_14, %c0_15] : memref<9x32x32xf32, #tpu.memory_space<vmem>>, vector<1x32x32xf32>
    %19 = vector.shape_cast %18 : vector<1x32x32xf32> to vector<32x32xf32>
    %c4 = arith.constant 4 : index
    %c0_16 = arith.constant 0 : index
    %c0_17 = arith.constant 0 : index
    %20 = vector.load %arg1[%c4, %c0_16, %c0_17] : memref<9x32x32xf32, #tpu.memory_space<vmem>>, vector<1x32x32xf32>
    %21 = vector.shape_cast %20 : vector<1x32x32xf32> to vector<32x32xf32>
    %c5 = arith.constant 5 : index
    %c0_18 = arith.constant 0 : index
    %c0_19 = arith.constant 0 : index
    %22 = vector.load %arg1[%c5, %c0_18, %c0_19] : memref<9x32x32xf32, #tpu.memory_space<vmem>>, vector<1x32x32xf32>
    %23 = vector.shape_cast %22 : vector<1x32x32xf32> to vector<32x32xf32>
    %c6 = arith.constant 6 : index
    %c0_20 = arith.constant 0 : index
    %c0_21 = arith.constant 0 : index
    %24 = vector.load %arg1[%c6, %c0_20, %c0_21] : memref<9x32x32xf32, #tpu.memory_space<vmem>>, vector<1x32x32xf32>
    %25 = vector.shape_cast %24 : vector<1x32x32xf32> to vector<32x32xf32>
    %c7 = arith.constant 7 : index
    %c0_22 = arith.constant 0 : index
    %c0_23 = arith.constant 0 : index
    %26 = vector.load %arg1[%c7, %c0_22, %c0_23] : memref<9x32x32xf32, #tpu.memory_space<vmem>>, vector<1x32x32xf32>
    %27 = vector.shape_cast %26 : vector<1x32x32xf32> to vector<32x32xf32>
    %c8 = arith.constant 8 : index
    %c0_24 = arith.constant 0 : index
    %c0_25 = arith.constant 0 : index
    %28 = vector.load %arg1[%c8, %c0_24, %c0_25] : memref<9x32x32xf32, #tpu.memory_space<vmem>>, vector<1x32x32xf32>
    %29 = vector.shape_cast %28 : vector<1x32x32xf32> to vector<32x32xf32>
    %cst = arith.constant dense<0.000000e+00> : vector<20x32xf32>
    %30 = tpu.matmul %1, %13, %cst {dimension_numbers = #tpu.dot_dimension_numbers<[1], [0], [0], [1], [0, 0, 1, 1], [], []>} : vector<20x32xf32>, vector<32x32xf32>, vector<20x32xf32> -> vector<20x32xf32>
    %31 = vector.broadcast %5 : vector<1x32xf32> to vector<20x32xf32>
    %32 = arith.addf %30, %31 : vector<20x32xf32>
    %cst_26 = arith.constant 0.000000e+00 : f32
    %33 = vector.broadcast %cst_26 : f32 to vector<20x32xf32>
    %34 = arith.maximumf %32, %33 : vector<20x32xf32>
    %cst_27 = arith.constant dense<0.000000e+00> : vector<20x32xf32>
    %35 = tpu.matmul %34, %15, %cst_27 {dimension_numbers = #tpu.dot_dimension_numbers<[1], [0], [0], [1], [0, 0, 1, 1], [], []>} : vector<20x32xf32>, vector<32x32xf32>, vector<20x32xf32> -> vector<20x32xf32>
    %36 = vector.broadcast %6 : vector<1x32xf32> to vector<20x32xf32>
    %37 = arith.addf %35, %36 : vector<20x32xf32>
    %38 = arith.mulf %37, %3 : vector<20x32xf32>
    %39 = vector.extract_strided_slice %38 {offsets = [0, 0], sizes = [16, 32], strides = [1, 1]} : vector<20x32xf32> to vector<16x32xf32>
    %40 = vector.extract_strided_slice %38 {offsets = [16, 0], sizes = [4, 32], strides = [1, 1]} : vector<20x32xf32> to vector<4x32xf32>
    %cst_28 = arith.constant dense<0.000000e+00> : vector<16x32xf32>
    %41 = tpu.matmul %39, %25, %cst_28 {dimension_numbers = #tpu.dot_dimension_numbers<[1], [0], [0], [1], [0, 0, 1, 1], [], []>} : vector<16x32xf32>, vector<32x32xf32>, vector<16x32xf32> -> vector<16x32xf32>
    %42 = vector.extract_strided_slice %39 {offsets = [7, 0], sizes = [1, 32], strides = [1, 1]} : vector<16x32xf32> to vector<1x32xf32>
    %43 = vector.extract_strided_slice %39 {offsets = [15, 0], sizes = [1, 32], strides = [1, 1]} : vector<16x32xf32> to vector<1x32xf32>
    %44 = tpu.concatenate %42, %43 in 0 : vector<1x32xf32>, vector<1x32xf32> -> vector<2x32xf32>
    %45 = vector.extract_strided_slice %41 {offsets = [7, 0], sizes = [1, 32], strides = [1, 1]} : vector<16x32xf32> to vector<1x32xf32>
    %46 = vector.extract_strided_slice %41 {offsets = [15, 0], sizes = [1, 32], strides = [1, 1]} : vector<16x32xf32> to vector<1x32xf32>
    %47 = tpu.concatenate %45, %46 in 0 : vector<1x32xf32>, vector<1x32xf32> -> vector<2x32xf32>
    %48 = math.absf %40 : vector<4x32xf32>
    %49 = vector.shape_cast %48 : vector<4x32xf32> to vector<1x4x32xf32>
    %cst_29 = arith.constant dense<0.000000e+00> : vector<1xf32>
    %50 = vector.multi_reduction <add>, %49, %cst_29 [1, 2] : vector<1x4x32xf32> to vector<1xf32>
    %51 = vector.shape_cast %50 : vector<1xf32> to vector<1x1x1xf32>
    %52 = vector.extract %51[0, 0, 0] : f32 from vector<1x1x1xf32>
    %53 = vector.broadcast %52 : f32 to vector<1x1xf32>
    %cst_30 = arith.constant dense<0.000000e+00> : vector<2x32xf32>
    %54 = tpu.matmul %44, %17, %cst_30 {dimension_numbers = #tpu.dot_dimension_numbers<[1], [0], [0], [1], [0, 0, 1, 1], [], []>} : vector<2x32xf32>, vector<32x32xf32>, vector<2x32xf32> -> vector<2x32xf32>
    %55 = vector.broadcast %7 : vector<1x32xf32> to vector<2x32xf32>
    %56 = arith.addf %54, %55 : vector<2x32xf32>
    %cst_31 = arith.constant dense<0.000000e+00> : vector<4x32xf32>
    %57 = tpu.matmul %40, %19, %cst_31 {dimension_numbers = #tpu.dot_dimension_numbers<[1], [0], [0], [1], [0, 0, 1, 1], [], []>} : vector<4x32xf32>, vector<32x32xf32>, vector<4x32xf32> -> vector<4x32xf32>
    %58 = vector.broadcast %8 : vector<1x32xf32> to vector<4x32xf32>
    %59 = arith.addf %57, %58 : vector<4x32xf32>
    %cst_32 = arith.constant dense<0.000000e+00> : vector<4x32xf32>
    %60 = tpu.matmul %40, %21, %cst_32 {dimension_numbers = #tpu.dot_dimension_numbers<[1], [0], [0], [1], [0, 0, 1, 1], [], []>} : vector<4x32xf32>, vector<32x32xf32>, vector<4x32xf32> -> vector<4x32xf32>
    %61 = vector.broadcast %9 : vector<1x32xf32> to vector<4x32xf32>
    %62 = arith.addf %60, %61 : vector<4x32xf32>
    %63 = vector.extract_strided_slice %56 {offsets = [0, 0], sizes = [1, 32], strides = [1, 1]} : vector<2x32xf32> to vector<1x32xf32>
    %64 = vector.extract_strided_slice %59 {offsets = [0, 0], sizes = [2, 32], strides = [1, 1]} : vector<4x32xf32> to vector<2x32xf32>
    %65 = vector.broadcast %63 : vector<1x32xf32> to vector<2x32xf32>
    %66 = arith.mulf %65, %64 : vector<2x32xf32>
    %67 = vector.extract_strided_slice %56 {offsets = [1, 0], sizes = [1, 32], strides = [1, 1]} : vector<2x32xf32> to vector<1x32xf32>
    %68 = vector.extract_strided_slice %59 {offsets = [2, 0], sizes = [2, 32], strides = [1, 1]} : vector<4x32xf32> to vector<2x32xf32>
    %69 = vector.broadcast %67 : vector<1x32xf32> to vector<2x32xf32>
    %70 = arith.mulf %69, %68 : vector<2x32xf32>
    %71 = tpu.concatenate %66, %70 in 0 : vector<2x32xf32>, vector<2x32xf32> -> vector<4x32xf32>
    %cst_33 = arith.constant dense<0.000000e+00> : vector<4x32xf32>
    %72 = tpu.matmul %71, %29, %cst_33 {dimension_numbers = #tpu.dot_dimension_numbers<[1], [0], [0], [1], [0, 0, 1, 1], [], []>} : vector<4x32xf32>, vector<32x32xf32>, vector<4x32xf32> -> vector<4x32xf32>
    %73 = vector.extract_strided_slice %72 {offsets = [0, 0], sizes = [2, 32], strides = [1, 1]} : vector<4x32xf32> to vector<2x32xf32>
    %74 = vector.extract_strided_slice %62 {offsets = [0, 0], sizes = [2, 32], strides = [1, 1]} : vector<4x32xf32> to vector<2x32xf32>
    %cst_34 = arith.constant dense<0xFF800000> : vector<32xf32>
    %75 = vector.multi_reduction <maximumf>, %73, %cst_34 [0] : vector<2x32xf32> to vector<32xf32>
    %76 = vector.shape_cast %75 : vector<32xf32> to vector<1x32xf32>
    %77 = vector.broadcast %76 : vector<1x32xf32> to vector<2x32xf32>
    %78 = arith.subf %73, %77 : vector<2x32xf32>
    %79 = math.exp %78 : vector<2x32xf32>
    %cst_35 = arith.constant dense<0.000000e+00> : vector<32xf32>
    %80 = vector.multi_reduction <add>, %79, %cst_35 [0] : vector<2x32xf32> to vector<32xf32>
    %81 = vector.shape_cast %80 : vector<32xf32> to vector<1x32xf32>
    %82 = vector.broadcast %81 : vector<1x32xf32> to vector<2x32xf32>
    %83 = arith.divf %79, %82 : vector<2x32xf32>
    %84 = arith.mulf %83, %74 : vector<2x32xf32>
    %cst_36 = arith.constant dense<0.000000e+00> : vector<32xf32>
    %85 = vector.multi_reduction <add>, %84, %cst_36 [0] : vector<2x32xf32> to vector<32xf32>
    %86 = vector.shape_cast %85 : vector<32xf32> to vector<1x32xf32>
    %87 = vector.extract_strided_slice %72 {offsets = [2, 0], sizes = [2, 32], strides = [1, 1]} : vector<4x32xf32> to vector<2x32xf32>
    %88 = vector.extract_strided_slice %62 {offsets = [2, 0], sizes = [2, 32], strides = [1, 1]} : vector<4x32xf32> to vector<2x32xf32>
    %cst_37 = arith.constant dense<0xFF800000> : vector<32xf32>
    %89 = vector.multi_reduction <maximumf>, %87, %cst_37 [0] : vector<2x32xf32> to vector<32xf32>
    %90 = vector.shape_cast %89 : vector<32xf32> to vector<1x32xf32>
    %91 = vector.broadcast %90 : vector<1x32xf32> to vector<2x32xf32>
    %92 = arith.subf %87, %91 : vector<2x32xf32>
    %93 = math.exp %92 : vector<2x32xf32>
    %cst_38 = arith.constant dense<0.000000e+00> : vector<32xf32>
    %94 = vector.multi_reduction <add>, %93, %cst_38 [0] : vector<2x32xf32> to vector<32xf32>
    %95 = vector.shape_cast %94 : vector<32xf32> to vector<1x32xf32>
    %96 = vector.broadcast %95 : vector<1x32xf32> to vector<2x32xf32>
    %97 = arith.divf %93, %96 : vector<2x32xf32>
    %98 = arith.mulf %97, %88 : vector<2x32xf32>
    %cst_39 = arith.constant dense<0.000000e+00> : vector<32xf32>
    %99 = vector.multi_reduction <add>, %98, %cst_39 [0] : vector<2x32xf32> to vector<32xf32>
    %100 = vector.shape_cast %99 : vector<32xf32> to vector<1x32xf32>
    %101 = tpu.concatenate %86, %100 in 0 : vector<1x32xf32>, vector<1x32xf32> -> vector<2x32xf32>
    %cst_40 = arith.constant dense<0.000000e+00> : vector<2x32xf32>
    %102 = tpu.matmul %101, %23, %cst_40 {dimension_numbers = #tpu.dot_dimension_numbers<[1], [0], [0], [1], [0, 0, 1, 1], [], []>} : vector<2x32xf32>, vector<32x32xf32>, vector<2x32xf32> -> vector<2x32xf32>
    %103 = vector.broadcast %10 : vector<1x32xf32> to vector<2x32xf32>
    %104 = arith.addf %102, %103 : vector<2x32xf32>
    %cst_41 = arith.constant dense<0.000000e+00> : vector<2x32xf32>
    %105 = tpu.matmul %104, %27, %cst_41 {dimension_numbers = #tpu.dot_dimension_numbers<[1], [0], [0], [1], [0, 0, 1, 1], [], []>} : vector<2x32xf32>, vector<32x32xf32>, vector<2x32xf32> -> vector<2x32xf32>
    %106 = arith.addf %47, %105 : vector<2x32xf32>
    %107 = vector.broadcast %11 : vector<1x32xf32> to vector<2x32xf32>
    %108 = arith.addf %106, %107 : vector<2x32xf32>
    %cst_42 = arith.constant 0.000000e+00 : f32
    %109 = vector.broadcast %cst_42 : f32 to vector<1x1xf32>
    %110 = arith.cmpf ogt, %53, %109 : vector<1x1xf32>
    %111 = vector.shape_cast %110 : vector<1x1xi1> to vector<1x1xi1>
    %112 = vector.broadcast %111 : vector<1x1xi1> to vector<2x32xi1>
    %113 = arith.select %112, %108, %44 : vector<2x32xi1>, vector<2x32xf32>
    %cst_43 = arith.constant dense<0.000000e+00> : vector<2x32xf32>
    %114 = tpu.matmul %113, %27, %cst_43 {dimension_numbers = #tpu.dot_dimension_numbers<[1], [0], [0], [1], [0, 0, 1, 1], [], []>} : vector<2x32xf32>, vector<32x32xf32>, vector<2x32xf32> -> vector<2x32xf32>
    %115 = vector.broadcast %11 : vector<1x32xf32> to vector<2x32xf32>
    %116 = arith.addf %114, %115 : vector<2x32xf32>
    %117 = vector.extract_strided_slice %116 {offsets = [0, 0], sizes = [1, 32], strides = [1, 1]} : vector<2x32xf32> to vector<1x32xf32>
    %118 = vector.shape_cast %117 : vector<1x32xf32> to vector<1x32xf32>
    %119 = vector.broadcast %118 : vector<1x32xf32> to vector<8x32xf32>
    %120 = vector.extract_strided_slice %116 {offsets = [1, 0], sizes = [1, 32], strides = [1, 1]} : vector<2x32xf32> to vector<1x32xf32>
    %121 = vector.shape_cast %120 : vector<1x32xf32> to vector<1x32xf32>
    %122 = vector.broadcast %121 : vector<1x32xf32> to vector<8x32xf32>
    %123 = tpu.concatenate %119, %122 in 0 : vector<8x32xf32>, vector<8x32xf32> -> vector<16x32xf32>
    %124 = arith.addf %41, %123 : vector<16x32xf32>
    %c0_44 = arith.constant 0 : index
    %c0_45 = arith.constant 0 : index
    %125 = vector.load %arg3[%c0_44, %c0_45] : memref<16x32xf32, #tpu.memory_space<vmem>>, vector<16x32xf32>
    tpu.vector_store %arg3[%c0_44, %c0_45], %124 {strides = array<i32>} : memref<16x32xf32, #tpu.memory_space<vmem>>, vector<16x32xf32>,
    return
  }
}

</mosaic_0001>

<bundles_post_ra>
// kernel: tile.8
= control target key start
LH: loop header
LB: loop body
LE: loop exit
PB: predicated region body
PF: predicated region fallthrough
CT: control target
= control target key end

     0   :  { %s22_s0 = inlined_call_operand.vmem [shape: f32[2], index: 0, kind: input, shape index: {}]   ;;  %s23_s1 = inlined_call_operand.vmem [shape: f32[2,2], index: 1, kind: output, shape index: {}]  }
   0x1   :  { %v4_v0 = vld [vmem:[%s22_s0] ss:$0 sm:$0xff] }
   0x2   :  { %5 = vst [vmem:[%s23_s1] sm:$0x3] %v4_v0 }

// kernel: social_context_encoder.1
= control target key start
LH: loop header
LB: loop body
LE: loop exit
PB: predicated region body
PF: predicated region fallthrough
CT: control target
= control target key end

     0   :  { %v1333_v3 = vmov 0.0|0.0   ;;  %vm1334_vm0 = vmmov 0   ;;  %v1335_v6 = vmov 0.0   ;;  %s1619_s0 = inlined_call_operand.vmem [shape: f32[2,20,32], index: 0, kind: input, shape index: {}]   ;;  %s1620_s1 = inlined_call_operand.vmem [shape: f32[9,32,32], index: 1, kind: input, shape index: {}]   ;;  %s1621_s2 = inlined_call_operand.vmem [shape: f32[7,32], index: 2, kind: input, shape index: {}]   ;;  %s1622_s3 = inlined_call_operand.hbm [shape: f32[16,32], index: 3, kind: output, shape index: {}]  }
   0x1   :  { %v23_v0 = vld [vmem:[%s1620_s1] sm:$0xff]  ;;  %v24_v1 = vld [vmem:[%s1620_s1 + $0x8] sm:$0xff]  ;;  %v25_v2 = vld [vmem:[%s1620_s1 + $0x10] sm:$0xff]  ;;  %1231 = vmatprep.subr.bf16.mxu0 %v1333_v3  ;;  %1117 = vmatprep.mubr.msk.f32.mxu0 %vm1334_vm0, %v1335_v6 }
   0x2   :  { %v1232_v4 = vpack.c.bf16 %v24_v1, %v23_v0  ;;  %v26_v5 = vld [vmem:[%s1620_s1 + $0x18] sm:$0xff]  ;;  %1237 = vmatprep.subr.bf16.mxu1 %v1333_v3  ;;  %v1007_v7 = vld [vmem:[%s1620_s1 + $0x20] sm:$0xff]  ;;  %v1008_v8 = vld [vmem:[%s1620_s1 + $0x28] sm:$0xff]  ;;  %1134 = vmatprep.mubr.msk.f32.mxu1 %vm1334_vm0, %v1335_v6 }
   0x3   :  { %v1235_v9 = vpack.c.bf16 %v26_v5, %v25_v2  ;;  %v1238_v10 = vpack.c.bf16 %v1008_v8, %v1007_v7 }
   0x4   :  { %1233 = vmatpush3.bf16.msra.mxu0 %v1232_v4 }
   0x5   :  { %8 = vsyncpa [#allocation3], 0  ;;  %1234 = vmatprep.subr.bf16.mxu0 %v1333_v3  ;;  %1239 = vmatpush3.bf16.msra.mxu1 %v1238_v10  ;;  %v15_v11 = vld [vmem:[%s1619_s0] sm:$0xff]  ;;  %vm71_vm1 = vcmask 261120   ;;  %v16_v12 = vld [vmem:[%s1619_s0 + $0x8] sm:$0xff]  ;;  %v67_v20 = vlaneseq  ;;  %vm345_vm2 = vcmask 1040384  }
   0x6   :  { %1240 = vmatprep.subr.bf16.mxu1 %v1333_v3  ;;  %v17_v13 = vld [vmem:[%s1619_s0 + $0x10] sm:$0xf]  ;;  %v1010_v15 = vld [vmem:[%s1620_s1 + $0x38] sm:$0xff]  ;;  %v1027_v17 = vld [vmem:[%s1620_s1 + $0xc0] sm:$0xff]  ;;  %vm355_vm3 = vcmask 257024   ;;  %vm605_vm4 = vcmask 1041408  }
   0x7   :  { %v1009_v14 = vld [vmem:[%s1620_s1 + $0x30] sm:$0xff]  ;;  %v1028_v18 = vld [vmem:[%s1620_s1 + $0xc8] sm:$0xff]  ;;  %v1414_v21 = vshrl.u32 %v67_v20, 7  ;;  %v1422_v23 = vld [vmem:[%s1621_s2] sm:$0x7f]  ;;  %vm680_vm5 = vcmask 254976  }
   0x8   :  { %1236 = vmatpush3.bf16.msra.mxu0 %v1235_v9  ;;  %v1241_v16 = vpack.c.bf16 %v1010_v15, %v1009_v14  ;;  %v1243_v19 = vpack.c.bf16 %v1028_v18, %v1027_v17  ;;  %v1029_v37 = vld [vmem:[%s1620_s1 + $0xd0] sm:$0xff]  ;;  %v1030_v38 = vld [vmem:[%s1620_s1 + $0xd8] sm:$0xff]  ;;  %v1011_v39 = vld [vmem:[%s1620_s1 + $0x40] sm:$0xff]  ;;  %vm708_vm6 = vcmask 257026  }
   0x9   :  { %v1417_v22 = vsub.s32 0, %v1414_v21  ;;  %v1247_v40 = vpack.c.bf16 %v1030_v38, %v1029_v37  ;;  %v1012_v41 = vld [vmem:[%s1620_s1 + $0x48] sm:$0xff]  ;;  %v1013_v43 = vld [vmem:[%s1620_s1 + $0x50] sm:$0xff]  ;;  %v1014_v44 = vld [vmem:[%s1620_s1 + $0x58] sm:$0xff]  ;;  %v1457_v46 = vsub.s32 1, %v1414_v21 }
   0xa   :  { %1242 = vmatpush3.bf16.msra.mxu1 %v1241_v16  ;;  %1244 = vmatprep.subr.bf16.mxu0 %v1243_v19  ;;  %v1252_v42 = vpack.c.bf16 %v1012_v41, %v1011_v39  ;;  %v1255_v45 = vpack.c.bf16 %v1014_v44, %v1013_v43  ;;  %v1004_v48 = vld [vmem:[%s1619_s0 + $0x18] sm:$0xff]  ;;  %v1015_v53 = vld [vmem:[%s1620_s1 + $0x60] sm:$0xff]  ;;  %v1016_v54 = vld [vmem:[%s1620_s1 + $0x68] sm:$0xff]  ;;  %v446_v39 = vsub.s32 3, %v1414_v21 }
   0xb   :  { %1118 = vmatmul.mubr.msk.f32.vlgmr.msra.gmra.mrb[0].mxu0 %vm71_vm1, %v15_v11  ;;  %1251 = vmatprep.subr.bf16.mxu1 %v1333_v3  ;;  %v70_v24 = vrot.slane %v1422_v23, %v1417_v22  ;;  %v167_v47 = vrot.slane %v1422_v23, %v1457_v46  ;;  %v1005_v55 = vld [vmem:[%s1619_s0 + $0x20] sm:$0xff]  ;;  %v1258_v59 = vpack.c.bf16 %v1016_v54, %v1015_v53  ;;  %v1020_v61 = vld [vmem:[%s1620_s1 + $0x88] sm:$0xff]  ;;  %v1017_v63 = vld [vmem:[%s1620_s1 + $0x70] sm:$0xff] }
   0xc   :  { %1120 = vmatprep.mubr.msk.f32.mxu0 %vm1334_vm0, %v1335_v6  ;;  %1246 = vmatpush3.bf16.msra.mxu0 %v1243_v19  ;;  %v1019_v60 = vld [vmem:[%s1620_s1 + $0x80] sm:$0xff]  ;;  %v1018_v0 = vld [vmem:[%s1620_s1 + $0x78] sm:$0xff]  ;;  %v1006_v1 = vld [vmem:[%s1619_s0 + $0x28] sm:$0xf] }
   0xd   :  { %1248 = vmatprep.subr.bf16.mxu0 %v1247_v40  ;;  %v1264_v9 = vpack.c.bf16 %v1020_v61, %v1019_v60  ;;  %v1261_v10 = vpack.c.bf16 %v1018_v0, %v1017_v63  ;;  %v1021_v11 = vld [vmem:[%s1620_s1 + $0x90] sm:$0xff]  ;;  %v1035_v18 = vld [vmem:[%s1620_s1 + $0x100] sm:$0xff]  ;;  %v1036_v19 = vld [vmem:[%s1620_s1 + $0x108] sm:$0xff] }
   0xe   :  { %v1270_v20 = vpack.c.bf16 %v1036_v19, %v1035_v18  ;;  %v1026_v61 = vld [vmem:[%s1620_s1 + $0xb8] sm:$0xff]  ;;  %v1031_v63 = vld [vmem:[%s1620_s1 + $0xe0] sm:$0xff]  ;;  %v1032_v0 = vld [vmem:[%s1620_s1 + $0xe8] sm:$0xff] }
   0xf   :  { %1121 = vmatmul.mubr.msk.f32.gmra.mrb[2].mxu0 %vm71_vm1, %v16_v12  ;;  %v1022_v12 = vld [vmem:[%s1620_s1 + $0x98] sm:$0xff] }
  0x10   :  { %1123 = vmatprep.mubr.msk.f32.mxu0 %vm1334_vm0, %v1335_v6  ;;  %1250 = vmatpush3.bf16.msra.mxu0 %v1247_v40  ;;  %v1267_v16 = vpack.c.bf16 %v1022_v12, %v1021_v11 }
  0x11   :  { %1257 = vmatprep.subr.bf16.mxu0 %v1333_v3 }
  0x13   :  { %1124 = vmatmul.mubr.msk.f32.gmra.mrb[4].mxu0 %vm71_vm1, %v17_v13 }
  0xde   :  { %v147_v25 = vpop.f32.mrb[0].mxu0 }
  0xdf   :  { %v148_v26 = vadd.f32 %v147_v25, %v70_v24  ;;  %v1119_v27 = vpop.f32.mrb[1].mxu0  ;;  %v1038_v25 = vld [vmem:[%s1620_s1 + $0x118] sm:$0xff] }
  0xe1   :  { %v161_v28 = vmax.f32 %v148_v26, 0.0 }
  0xe2   :  { %v152_v29 = vpop.f32.mrb[2].mxu0 }
  0xe3   :  { %v153_v30 = vadd.f32 %v152_v29, %v70_v24  ;;  %v1122_v31 = vpop.f32.mrb[3].mxu0  ;;  %1135 = vmatmul.mubr.msk.f32.vlgmr.msra.gmra.mrb[0].mxu1 %vm71_vm1, %v161_v28 }
  0xe4   :  { %1137 = vmatprep.mubr.msk.f32.mxu1 %vm1334_vm0, %v1335_v6  ;;  %1253 = vmatpush3.bf16.msra.mxu1 %v1252_v42 }
  0xe5   :  { %v162_v32 = vmax.f32 %v153_v30, 0.0  ;;  %1254 = vmatprep.subr.bf16.mxu1 %v1333_v3 }
  0xe6   :  { %v157_v33 = vpop.f32.mrb[4].mxu0 }
  0xe7   :  { %v158_v34 = vadd.f32 %v157_v33, %v70_v24  ;;  %1138 = vmatmul.mubr.msk.f32.gmra.mrb[2].mxu1 %vm71_vm1, %v162_v32  ;;  %v1125_v35 = vpop.f32.mrb[5].mxu0  ;;  %v1037_v24 = vld [vmem:[%s1620_s1 + $0x110] sm:$0xff] }
  0xe8   :  { %1140 = vmatprep.mubr.msk.f32.mxu1 %vm1334_vm0, %v1335_v6  ;;  %1256 = vmatpush3.bf16.msra.mxu1 %v1255_v45  ;;  %v1273_v26 = vpack.c.bf16 %v1038_v25, %v1037_v24  ;;  %v447_v45 = vrot.slane %v1422_v23, %v446_v39 }
  0xe9   :  { %v163_v36 = vmax.f32 %v158_v34, 0.0  ;;  %1263 = vmatprep.subr.bf16.mxu1 %v1333_v3  ;;  %v369_v34 = vsub.s32 2, %v1414_v21 }
  0xeb   :  { %1141 = vmatmul.mubr.msk.f32.gmra.mrb[4].mxu1 %vm71_vm1, %v163_v36  ;;  %v370_v38 = vrot.slane %v1422_v23, %v369_v34 }
  0xec   :  { %1162 = vmatprep.mubr.msk.f32.mxu1 %vm1334_vm0, %v1335_v6 }
 0x1b6   :  { %v243_v49 = vpop.f32.mrb[0].mxu1 }
 0x1b7   :  { %v244_v50 = vadd.f32 %v243_v49, %v167_v47  ;;  %v1136_v51 = vpop.f32.mrb[1].mxu1 }
 0x1b9   :  { %v257_v52 = vmul.f32 %v1004_v48, %v244_v50 }
 0x1ba   :  { %v248_v56 = vpop.f32.mrb[2].mxu1 }
 0x1bb   :  { %v249_v57 = vadd.f32 %v248_v56, %v167_v47  ;;  %v1139_v58 = vpop.f32.mrb[3].mxu1  ;;  %1151 = vmatprep.mubr.msk.f32.mxu0 %vm71_vm1, %v257_v52  ;;  %v341_v4 = vrot.slane %v257_v52, 7 }
 0x1bc   :  { %v1024_v58 = vld [vmem:[%s1620_s1 + $0xa8] sm:$0xff] }
 0x1bd   :  { %v258_v62 = vmul.f32 %v1005_v55, %v249_v57  ;;  %v1023_v57 = vld [vmem:[%s1620_s1 + $0xa0] sm:$0xff] }
 0x1be   :  { %v253_v2 = vpop.f32.mrb[4].mxu1  ;;  %v1276_v60 = vpack.c.bf16 %v1024_v58, %v1023_v57 }
 0x1bf   :  { %v343_v5 = vrot.slane %v258_v62, 6  ;;  %v254_v7 = vadd.f32 %v253_v2, %v167_v47  ;;  %1152 = vmatmul.mubr.msk.f32.vlgmr.msra.gmra.mrb[6].mxu0 %vm71_vm1, %v258_v62  ;;  %v1142_v8 = vpop.f32.mrb[5].mxu1 }
 0x1c0   :  { %1259 = vmatpush3.bf16.msra.mxu0 %v1258_v59  ;;  %1173 = vmatprep.mubr.msk.f32.mxu0 %vm1334_vm0, %v1335_v6  ;;  %v1025_v59 = vld [vmem:[%s1620_s1 + $0xb0] sm:$0xff] }
 0x1c1   :  { %v259_v13 = vmul.f32 %v1006_v1, %v254_v7  ;;  %v1499_v14 = vsel %vm345_vm2, %v341_v4, %v343_v5  ;;  %1260 = vmatprep.subr.bf16.mxu0 %v1333_v3  ;;  %v1279_v62 = vpack.c.bf16 %v1026_v61, %v1025_v59  ;;  %v1569_v1 = vpack.c.bf16 %v1032_v0, %v1031_v63 }
 0x1c2   :  { %1163 = vmatmul.mubr.msk.f32.vlgmr.msra.gmra.mrb[6].mxu1 %vm71_vm1, %v1499_v14 }
 0x1c3   :  { %1265 = vmatpush3.bf16.msra.mxu1 %v1264_v9  ;;  %v354_v15 = vand.u32 2147483647, %v259_v13  ;;  %1184 = vmatprep.mubr.msk.f32.mxu1 %vm1334_vm0, %v1335_v6 }
 0x1c4   :  { %1262 = vmatpush3.bf16.msra.mxu0 %v1261_v10  ;;  %1266 = vmatprep.subr.bf16.mxu1 %v1333_v3 }
 0x1c5   :  { %v356_v17 = vsel %vm355_vm3, %v354_v15, 0.0  ;;  %1269 = vmatprep.subr.bf16.mxu0 %v1333_v3 }
 0x1c6   :  { %357 = vadd.xlane.f32.xlu0 %v356_v17 }
 0x1c7   :  { %1174 = vmatmul.mubr.msk.f32.vlgmr.msra.gmra.mrb[8].mxu0 %vm71_vm1, %v259_v13  ;;  %1268 = vmatpush3.bf16.msra.mxu1 %v1267_v16 }
 0x1c8   :  { %1195 = vmatprep.mubr.msk.f32.mxu0 %vm1334_vm0, %v1335_v6  ;;  %1275 = vmatprep.subr.bf16.mxu1 %v1333_v3 }
 0x1c9   :  { %1271 = vmatpush3.bf16.msra.mxu0 %v1270_v20 }
 0x1ca   :  { %1185 = vmatmul.mubr.msk.f32.vlgmr.msra.gmra.mrb[8].mxu1 %vm71_vm1, %v259_v13  ;;  %1272 = vmatprep.subr.bf16.mxu0 %v1333_v3 }
 0x1cb   :  { %1206 = vmatprep.mubr.msk.f32.mxu1 %vm1334_vm0, %v1335_v6  ;;  %1277 = vmatpush3.bf16.msra.mxu1 %v1276_v60 }
 0x1cc   :  { %1278 = vmatprep.subr.bf16.mxu1 %v1333_v3 }
 0x1cd   :  { %1274 = vmatpush3.bf16.msra.mxu0 %v1273_v26 }
 0x1ce   :  { %1281 = vmatprep.subr.bf16.mxu0 %v1333_v3 }
 0x1cf   :  { %1280 = vmatpush3.bf16.msra.mxu1 %v1279_v62 }
 0x1d0   :  { %1287 = vmatprep.subr.bf16.mxu1 %v1333_v3 }
 0x253   :  { %v358_v27 = vpop.xlane.xlu0 %357 }
 0x254   :  { %v359_v28 = vrot.slane %v358_v27, 4 }
 0x256   :  { %v360_v29 = vadd.f32 %v359_v28, %v358_v27 }
 0x258   :  { %v361_v30 = vrot.slane %v360_v29, 2 }
 0x25a   :  { %v362_v31 = vadd.f32 %v361_v30, %v360_v29 }
 0x25c   :  { %v363_v32 = vrot.slane %v362_v31, 1 }
 0x25e   :  { %v364_v33 = vadd.f32 %v363_v32, %v362_v31 }
 0x260   :  { %1293 = vpush %v364_v33 }
 0x291   :  { %s1294_s13 = spop %1293 }
 0x292   :  { %v1530_v35 = vpop.f32.mrb[6].mxu0 }
 0x293   :  { %v351_v36 = vrot.slane %v1530_v35, 6  ;;  %v1533_v37 = vpop.f32.mrb[7].mxu0 }
 0x294   :  { %v348_v40 = vrot.slane %v1533_v37, 7 }
 0x295   :  { %v440_v41 = vpop.f32.mrb[6].mxu1 }
 0x296   :  { %v1164_v42 = vpop.f32.mrb[7].mxu1  ;;  %v1539_v43 = vsel %vm345_vm2, %v348_v40, %v351_v36  ;;  %v441_v44 = vadd.f32 %v440_v41, %v370_v38 }
 0x298   :  { %v598_v48 = vrot.slane %v441_v44, %v1417_v22  ;;  %v603_v49 = vrot.slane %v441_v44, %v1457_v46 }
 0x29a   :  { %v517_v47 = vpop.f32.mrb[8].mxu0 }
 0x29b   :  { %v518_v50 = vadd.f32 %v517_v47, %v447_v45  ;;  %v1175_v51 = vpop.f32.mrb[9].mxu0 }
 0x29d   :  { %v599_v52 = vmul.f32 %v598_v48, %v518_v50  ;;  %v604_v53 = vmul.f32 %v603_v49, %v518_v50  ;;  %v1544_v54 = vpop.f32.mrb[8].mxu1  ;;  %v523_v49 = vsub.s32 4, %v1414_v21 }
 0x29e   :  { %v1186_v55 = vpop.f32.mrb[9].mxu1 }
 0x29f   :  { %v606_v56 = vsel %vm605_vm4, %v599_v52, %v604_v53  ;;  %v524_v50 = vrot.slane %v1422_v23, %v523_v49 }
 0x2a0   :  { %1196 = vmatmul.mubr.msk.f32.vlgmr.msra.gmra.mrb[10].mxu0 %vm71_vm1, %v606_v56 }
 0x2a1   :  { %1217 = vmatprep.mubr.msk.f32.mxu0 %vm1334_vm0, %v1335_v6  ;;  %1283 = vmatpush3.bf16.msra.mxu0 %v1569_v1  ;;  %v592_v52 = vadd.f32 %v1544_v54, %v524_v50 }
 0x2a2   :  { %1284 = vmatprep.subr.bf16.mxu0 %v1333_v3 }
 0x373   :  { %v676_v2 = vpop.f32.mrb[10].mxu0 }
 0x374   :  { %v681_v4 = vsel %vm680_vm5, %v676_v2, -inf  ;;  %v709_v5 = vsel %vm708_vm6, %v676_v2, -inf  ;;  %v1197_v7 = vpop.f32.mrb[11].mxu0 }
 0x375   :  { %v682_v8 = vrot.slane %v681_v4, 4  ;;  %v710_v9 = vrot.slane %v709_v5, 4 }
 0x377   :  { %v683_v10 = vmax.f32 %v681_v4, %v682_v8  ;;  %v711_v11 = vmax.f32 %v709_v5, %v710_v9 }
 0x379   :  { %v684_v12 = vrot.slane %v683_v10, 2  ;;  %v712_v13 = vrot.slane %v711_v11, 2 }
 0x37b   :  { %v685_v15 = vmax.f32 %v683_v10, %v684_v12  ;;  %v713_v16 = vmax.f32 %v711_v11, %v712_v13  ;;  %v1033_v13 = vld [vmem:[%s1620_s1 + $0xf0] sm:$0xff] }
 0x37d   :  { %v686_v17 = vrot.slane %v685_v15, 1  ;;  %v714_v18 = vrot.slane %v713_v16, 1 }
 0x37f   :  { %v687_v19 = vmax.f32 %v685_v15, %v686_v17  ;;  %v715_v20 = vmax.f32 %v713_v16, %v714_v18  ;;  %v1034_v15 = vld [vmem:[%s1620_s1 + $0xf8] sm:$0xff]  ;;  %v745_v17 = vsub.s32 5, %v1414_v21  ;;  %s1336_s1 = smov [#allocation2]  }
 0x380   :  { %v1285_v16 = vpack.c.bf16 %v1034_v15, %v1033_v13  ;;  %s993_s14 = sshll.u32 %s1336_s1, 4  ;;  %s994_s14 = int_to_ptr.vmem [resolvable:$true] %s993_s14 }
 0x381   :  { %v688_v24 = vsub.f32 %v676_v2, %v687_v19  ;;  %v716_v25 = vsub.f32 %v676_v2, %v715_v20  ;;  %s1309_s15 = scalar_lea.vmem %s994_s14, 256  ;;  %p1314_p1 = scmp.lt.s32.totalorder %s994_s14, %s994_s14 }
 0x382   :  { %1286 = vmatpush3.bf16.msra.mxu0 %v1285_v16  ;;  %p1310_p0 = scmp.ne.s32.totalorder %s994_s14, %s1309_s15  ;;  %p1315_p2 = scmp.lt.s32.totalorder %s1309_s15, %s1309_s15 }
 0x383   :  { %v689_v26 = vmul.f32 1.442695, %v688_v24  ;;  %v717_v27 = vmul.f32 1.442695, %v716_v25  ;;  %v366_v25 = vstv %s1294_s13 }
 0x384   :  { %vm899_vm7 = vcmp.gt.f32.partialorder %v366_v25, 0.0  ;;  %p1316_p3 = por %p1315_p2, %p1314_p1 }
 0x385   :  { %1301 = vpow2.f32 %v689_v26 }
 0x386   :  { %1303 = vpow2.f32 %v717_v27  ;;  %p1317_p4 = pnand %p1316_p3, %p1310_p0 }
 0x38f   :  { %v1302_v28 = vpop.eup %1301 }
 0x390   :  { %v1304_v29 = vpop.eup %1303  ;;  %v691_v30 = vsel %vm680_vm5, %v1302_v28, 0.0 }
 0x391   :  { %v692_v31 = vrot.slane %v691_v30, 4  ;;  %v720_v32 = vrot.slane %v1304_v29, 2 }
 0x393   :  { %v693_v33 = vadd.f32 %v692_v31, %v691_v30  ;;  %v722_v34 = vsel %vm680_vm5, %v720_v32, 0.0 }
 0x394   :  { %v723_v36 = vrot.slane %v722_v34, 4 }
 0x395   :  { %v694_v38 = vrot.slane %v693_v33, 2 }
 0x396   :  { %v724_v39 = vadd.f32 %v723_v36, %v722_v34 }
 0x397   :  { %v695_v40 = vadd.f32 %v694_v38, %v693_v33 }
 0x398   :  { %v725_v41 = vrot.slane %v724_v39, 2 }
 0x399   :  { %v696_v42 = vrot.slane %v695_v40, 1 }
 0x39a   :  { %v726_v44 = vadd.f32 %v725_v41, %v724_v39 }
 0x39b   :  { %v697_v45 = vadd.f32 %v696_v42, %v695_v40 }
 0x39c   :  { %v727_v47 = vrot.slane %v726_v44, 1 }
 0x39d   :  { %1305 = vrcp.f32 %v697_v45 }
 0x39e   :  { %v728_v48 = vadd.f32 %v727_v47, %v726_v44 }
 0x3a0   :  { %1307 = vrcp.f32 %v728_v48 }
 0x3a7   :  { %v1306_v51 = vpop.eup %1305 }
 0x3a8   :  { %v699_v53 = vmul.f32 %v1306_v51, %v1302_v28 }
 0x3aa   :  { %v1308_v55 = vpop.eup %1307  ;;  %v700_v56 = vmul.f32 %v699_v53, %v592_v52 }
 0x3ab   :  { %v730_v57 = vmul.f32 %v1308_v55, %v1304_v29 }
 0x3ac   :  { %v701_v58 = vsel %vm680_vm5, %v700_v56, 0.0 }
 0x3ad   :  { %v702_v59 = vrot.slane %v701_v58, 4  ;;  %v731_v60 = vmul.f32 %v730_v57, %v592_v52 }
 0x3af   :  { %v703_v61 = vadd.f32 %v702_v59, %v701_v58  ;;  %v733_v62 = vrot.slane %v731_v60, 2 }
 0x3b1   :  { %v704_v63 = vrot.slane %v703_v61, 2  ;;  %v735_v0 = vsel %vm680_vm5, %v733_v62, 0.0 }
 0x3b2   :  { %v736_v2 = vrot.slane %v735_v0, 4 }
 0x3b3   :  { %v705_v4 = vadd.f32 %v704_v63, %v703_v61 }
 0x3b4   :  { %v737_v5 = vadd.f32 %v736_v2, %v735_v0 }
 0x3b5   :  { %v706_v8 = vrot.slane %v705_v4, 1 }
 0x3b6   :  { %v738_v7 = vrot.slane %v737_v5, 2 }
 0x3b7   :  { %v707_v10 = vadd.f32 %v706_v8, %v705_v4 }
 0x3b8   :  { %v739_v9 = vadd.f32 %v738_v7, %v737_v5 }
 0x3ba   :  { %v740_v54 = vrot.slane %v739_v9, 1 }
 0x3bc   :  { %v741_v11 = vadd.f32 %v740_v54, %v739_v9 }
 0x3be   :  { %v742_v12 = vsel %vm345_vm2, %v707_v10, %v741_v11 }
 0x3bf   :  { %1207 = vmatmul.mubr.msk.f32.vlgmr.msra.gmra.mrb[10].mxu1 %vm71_vm1, %v742_v12 }
 0x3c0   :  { %1289 = vmatpush3.bf16.msra.mxu1 %v1569_v1  ;;  %1228 = vmatprep.mubr.msk.f32.mxu1 %vm1334_vm0, %v1335_v6  ;;  %v746_v1 = vrot.slane %v1422_v23, %v745_v17 }
 0x3c1   :  { %1290 = vmatprep.subr.bf16.mxu1 %v1333_v3  ;;  %v896_v3 = vsub.s32 6, %v1414_v21 }
 0x3c3   :  { %v897_v20 = vrot.slane %v1422_v23, %v896_v3 }
 0x3c4   :  { %1292 = vmatpush3.bf16.msra.mxu1 %v1285_v16 }
 0x492   :  { %v816_v18 = vpop.f32.mrb[10].mxu1 }
 0x493   :  { %v817_v19 = vadd.f32 %v816_v18, %v746_v1  ;;  %v1208_v6 = vpop.f32.mrb[11].mxu1 }
 0x495   :  { %1218 = vmatmul.mubr.msk.f32.vlgmr.msra.gmra.mrb[12].mxu0 %vm71_vm1, %v817_v19 }
 0x568   :  { %v889_v24 = vpop.f32.mrb[12].mxu0 }
 0x569   :  { %v893_v26 = vadd.f32 %v889_v24, %v1539_v43  ;;  %v1219_v27 = vpop.f32.mrb[13].mxu0 }
 0x56b   :  { %v898_v28 = vadd.f32 %v897_v20, %v893_v26 }
 0x56d   :  { %v902_v29 = vsel %vm899_vm7, %v898_v28, %v1499_v14 }
 0x56e   :  { %1229 = vmatmul.mubr.msk.f32.vlgmr.msra.gmra.mrb[12].mxu1 %vm71_vm1, %v902_v29 }
 0x641   :  { %v972_v30 = vpop.f32.mrb[12].mxu1 }
 0x642   :  { %v973_v31 = vadd.f32 %v972_v30, %v897_v20  ;;  %v1230_v32 = vpop.f32.mrb[13].mxu1 }
 0x644   :  { %v979_v21 = vrot.slane %v973_v31, %v1417_v22  ;;  %v983_v23 = vrot.slane %v973_v31, %v1457_v46 }
 0x646   :  { %v984_v33 = vadd.f32 %v979_v21, %v1533_v37  ;;  %v985_v43 = vadd.f32 %v1530_v35, %v983_v23 }
 0x648   :  { %986 = vst.msk [vmem:[#allocation2] sm:$0xff] %vm71_vm1, %v984_v33  ;;  %987 = vst.msk [vmem:[#allocation2 + $0x8] sm:$0xff] %vm71_vm1, %v985_v43 }
 0x649   :  { %1320 = shalt.err (!%p1317_p4)
}
 0x64a   :  { %s1321_s17 = scalar_lea.hbm %s1622_s3, 256 }
 0x64b   :  { %p1322_p5 = scmp.ne.s32.totalorder %s1622_s3, %s1321_s17  ;;  %p1325_p6 = scmp.lt.u32.totalorder %s1321_s17, %s1622_s3 }
 0x64d   :  { %p1327_p7 = pnand %p1325_p6, %p1322_p5 }
 0x64f   :  { %1330 = shalt.err (!%p1327_p7)
}
 0x650   :  { %s1337_s22 = smov 128   ;;  %s1338_s23 = smov 8  }
 0x651   :  { %999 = dma.vmem_to_hbm [thread:$0]  %s994_s14, 256, %s1622_s3, [#allocation3], %s1337_s22, %s1337_s22, %s1338_s23  }
 0x652   :  { %1331 = dma.done.wait [#allocation3], 256  }
 0x653   :  { %1332 = vsyncadd [#allocation3], 4294967040 }
 0x654   :  { %1003 = vsyncpa [#allocation3], 1 }

</bundles_post_ra>
